<compile_context>
chip_gen: v7x
topology: tpu7x:2x2x1
jax: 0.10.0
libtpu: 0.0.40
codegen_flags: <defaults>
</compile_context>

<pallas_src>
import jax
import jax.numpy as jnp
from jax.experimental import pallas as pl
from jax.experimental.pallas import tpu as pltpu

LANE = 128
BATCH_ALIGN = 16  # bf16 packs 2 rows per 32-bit sublane -> (16,128) native tile


def _round_up(n: int, m: int) -> int:
    return ((n + m - 1) // m) * m


def _pad_to(a, target_shape):
    pads = [(0, t - s) for s, t in zip(a.shape, target_shape)]
    if all(p == (0, 0) for p in pads):
        return a
    return jnp.pad(a, pads)


def _pick_tile_b(batch: int) -> int:
    """Batch tile: full batch for small B; 256-512 rows (>=2 grid steps) for big B."""
    bp = _round_up(batch, BATCH_ALIGN)
    if bp <= 256:
        return bp
    for t in (512, 448, 384, 320, 256):
        if bp % t == 0 and bp // t >= 2:
            return t
    return 256


def mlp_kernel(x_ref,
               w1_ref, b1_ref,
               w2_ref, b2_ref,
               w3_ref, b3_ref,
               w4_ref, b4_ref,
               out_ref):
    """Fused 4-layer MLP forward on one (TILE_B, Fp) batch tile.

    Operands are bf16 (lane-dense, last dim multiple of 128); biases are f32;
    every matmul accumulates in f32 on the MXU. Weights/biases are full-array,
    single-buffered VMEM-resident blocks across grid steps.
    """
    x = x_ref[...]                                                   # bf16

    # Layer 1: (TB, Fp) @ (Fp, 512) + (1, 512) -> ReLU
    h1 = jnp.dot(x, w1_ref[...], preferred_element_type=jnp.float32) + b1_ref[...]
    h1 = jnp.maximum(h1, 0.0).astype(jnp.bfloat16)

    # Layer 2: (TB, 512) @ (512, 128) + (1, 128) -> ReLU
    h2 = jnp.dot(h1, w2_ref[...], preferred_element_type=jnp.float32) + b2_ref[...]
    h2 = jnp.maximum(h2, 0.0).astype(jnp.bfloat16)

    # Layer 3: (TB, 128) @ (128, 128) + (1, 128) -> ReLU
    h3 = jnp.dot(h2, w3_ref[...], preferred_element_type=jnp.float32) + b3_ref[...]
    h3 = jnp.maximum(h3, 0.0).astype(jnp.bfloat16)

    # Layer 4 (logits, padded to 128 lanes): (TB, 128) @ (128, 128) + (1, 128)
    logits = jnp.dot(h3, w4_ref[...], preferred_element_type=jnp.float32) + b4_ref[...]
    out_ref[...] = logits.astype(out_ref.dtype)


def prepare_params(params):
    """One-time padding + bf16 cast of weights (biases stay f32). Call once."""
    w1, b1 = params["w1"], params["b1"]
    w2, b2 = params["w2"], params["b2"]
    w3, b3 = params["w3"], params["b3"]
    w4, b4 = params["w4"], params["b4"]

    F = int(w1.shape[0])
    num_classes = int(w4.shape[1])

    Fp = _round_up(F, LANE)                 # 768 -> 768
    H1 = _round_up(int(w1.shape[1]), LANE)  # 500 -> 512
    H2 = _round_up(int(w2.shape[1]), LANE)  # 100 -> 128
    H3 = _round_up(int(w3.shape[1]), LANE)  #  50 -> 128
    Cp = _round_up(num_classes, LANE)       #   2 -> 128

    prep = {
        "w1p": _pad_to(w1, (Fp, H1)).astype(jnp.bfloat16),
        "b1p": _pad_to(b1.reshape(1, -1).astype(jnp.float32), (1, H1)),
        "w2p": _pad_to(w2, (H1, H2)).astype(jnp.bfloat16),
        "b2p": _pad_to(b2.reshape(1, -1).astype(jnp.float32), (1, H2)),
        "w3p": _pad_to(w3, (H2, H3)).astype(jnp.bfloat16),
        "b3p": _pad_to(b3.reshape(1, -1).astype(jnp.float32), (1, H3)),
        "w4p": _pad_to(w4, (H3, Cp)).astype(jnp.bfloat16),
        "b4p": _pad_to(b4.reshape(1, -1).astype(jnp.float32), (1, Cp)),
        "input_size": F, "num_classes": num_classes,
        "Fp": Fp, "H1": H1, "H2": H2, "H3": H3, "Cp": Cp,
    }
    return prep


def linear_catdog_forward(x_nchw, prep):
    """x_nchw: (B, C, H, W). Returns f32 logits of shape (B, num_classes)."""
    B = x_nchw.shape[0]
    # nn.Flatten: row-major flatten of (C, H, W) per example; cast to bf16 operand.
    x_flat = x_nchw.reshape(B, -1).astype(jnp.bfloat16)
    F = x_flat.shape[1]
    assert F == prep["input_size"], "input size mismatch with prepared params"

    Fp, H1, H2, H3, Cp = prep["Fp"], prep["H1"], prep["H2"], prep["H3"], prep["Cp"]

    TILE_B = _pick_tile_b(B)
    Bp = _round_up(B, TILE_B)
    x_pad = _pad_to(x_flat, (Bp, Fp))       # no-op when already aligned
    grid = (Bp // TILE_B,)

    def resident(shape):
        # Grid-invariant operand: constant index_map + single buffer.
        return pl.BlockSpec(shape, lambda i: (0, 0), pipeline_mode=pl.Buffered(1))

    logits_padded = pl.pallas_call(
        mlp_kernel,
        out_shape=jax.ShapeDtypeStruct((Bp, Cp), jnp.bfloat16),
        grid=grid,
        in_specs=[
            pl.BlockSpec((TILE_B, Fp), lambda i: (i, 0)),   # x: tiled over batch
            resident((Fp, H1)), resident((1, H1)),          # w1, b1 (VMEM-resident)
            resident((H1, H2)), resident((1, H2)),          # w2, b2
            resident((H2, H3)), resident((1, H3)),          # w3, b3
            resident((H3, Cp)), resident((1, Cp)),          # w4, b4
        ],
        out_specs=pl.BlockSpec((TILE_B, Cp), lambda i: (i, 0)),
        compiler_params=pltpu.CompilerParams(
            dimension_semantics=("parallel",)),
    )(x_pad, prep["w1p"], prep["b1p"], prep["w2p"], prep["b2p"],
      prep["w3p"], prep["b3p"], prep["w4p"], prep["b4p"])

    # Slice away batch padding + padded logit lanes; tiny cast back to f32.
    return logits_padded[:B, :prep["num_classes"]].astype(jnp.float32)


def predict(x_nchw, prep):
    """Equivalent of LinearCatDogModel.predict: argmax over class axis."""
    # TODO(synk): argmax could be fused into the kernel to skip logit writeback.
    logits = linear_catdog_forward(x_nchw, prep)
    return jnp.argmax(logits, axis=1)


def init_params(key, input_size, num_classes):
    """Deterministic init mirroring nn.Linear shapes (weights stored (in, out))."""
    sizes = [(input_size, 500), (500, 100), (100, 50), (50, num_classes)]
    params = {}
    for idx, (fan_in, fan_out) in enumerate(sizes, start=1):
        key, kw, kb = jax.random.split(key, 3)
        bound = 1.0 / jnp.sqrt(fan_in)  # same scale as PyTorch default uniform init
        params[f"w{idx}"] = jax.random.uniform(
            kw, (fan_in, fan_out), jnp.float32, minval=-bound, maxval=bound)
        params[f"b{idx}"] = jax.random.uniform(
            kb, (1, fan_out), jnp.float32, minval=-bound, maxval=bound)
    return params


if __name__ == "__main__":
    # Small, module-consistent shapes: batch=2, channels=3, image 16x16,
    # num_classes=2 (cat/dog).  input_size = 16*16*3 = 768.
    B, C, H, W = 2, 3, 16, 16
    NUM_CLASSES = 2
    INPUT_SIZE = C * H * W

    key = jax.random.PRNGKey(0)
    key, kx = jax.random.split(key)
    x = jax.random.normal(kx, (B, C, H, W), dtype=jnp.float32)

    params = init_params(key, INPUT_SIZE, NUM_CLASSES)
    prep = prepare_params(params)           # pad + bf16-cast once, not per call

    logits = linear_catdog_forward(x, prep)
    logits = jax.block_until_ready(logits)

    # Reference check in plain f32 JAX (unpadded). bf16 operands in the kernel
    # round the real values, so use a loose tolerance (accumulation stays f32).
    xf = x.reshape(B, -1)
    ref = jnp.maximum(xf @ params["w1"] + params["b1"], 0.0)
    ref = jnp.maximum(ref @ params["w2"] + params["b2"], 0.0)
    ref = jnp.maximum(ref @ params["w3"] + params["b3"], 0.0)
    ref = ref @ params["w4"] + params["b4"]
    assert logits.shape == (B, NUM_CLASSES)
    assert jnp.allclose(logits, ref, atol=5e-2, rtol=5e-2)

    # predict() equivalent (argmax over the sliced class axis).
    pred = predict(x, prep)
    pred = jax.block_until_ready(pred)
    assert pred.shape == (B,)
    assert bool(jnp.all((pred >= 0) & (pred < NUM_CLASSES)))

    print("KERNEL_OK")
</pallas_src>

<mosaic_0001>
module attributes {stable_mosaic.version = 11 : i64} {
  func.func @mlp_kernel(%arg0: i32, %arg1: memref<16x768xbf16, #tpu.memory_space<vmem>>, %arg2: memref<768x512xbf16, #tpu.memory_space<vmem>>, %arg3: memref<1x512xf32, #tpu.memory_space<vmem>>, %arg4: memref<512x128xbf16, #tpu.memory_space<vmem>>, %arg5: memref<1x128xf32, #tpu.memory_space<vmem>>, %arg6: memref<128x128xbf16, #tpu.memory_space<vmem>>, %arg7: memref<1x128xf32, #tpu.memory_space<vmem>>, %arg8: memref<128x128xbf16, #tpu.memory_space<vmem>>, %arg9: memref<1x128xf32, #tpu.memory_space<vmem>>, %arg10: memref<16x128xbf16, #tpu.memory_space<vmem>>) attributes {dimension_semantics = [#tpu.dimension_semantics<parallel>], iteration_bounds = array<i64: 1>, scalar_prefetch = 0 : i64, scratch_operands = 0 : i64, tpu.core_type = #tpu.core_type<tc>, window_params = [{transform_indices = @transform_0, window_bounds = array<i64: 16, 768>}, {pipeline_mode = #tpu.pipeline_mode<synchronous>, transform_indices = @transform_1, window_bounds = array<i64: 768, 512>}, {pipeline_mode = #tpu.pipeline_mode<synchronous>, transform_indices = @transform_2, window_bounds = array<i64: 1, 512>}, {pipeline_mode = #tpu.pipeline_mode<synchronous>, transform_indices = @transform_3, window_bounds = array<i64: 512, 128>}, {pipeline_mode = #tpu.pipeline_mode<synchronous>, transform_indices = @transform_4, window_bounds = array<i64: 1, 128>}, {pipeline_mode = #tpu.pipeline_mode<synchronous>, transform_indices = @transform_5, window_bounds = array<i64: 128, 128>}, {pipeline_mode = #tpu.pipeline_mode<synchronous>, transform_indices = @transform_6, window_bounds = array<i64: 1, 128>}, {pipeline_mode = #tpu.pipeline_mode<synchronous>, transform_indices = @transform_7, window_bounds = array<i64: 128, 128>}, {pipeline_mode = #tpu.pipeline_mode<synchronous>, transform_indices = @transform_8, window_bounds = array<i64: 1, 128>}, {transform_indices = @transform_9, window_bounds = array<i64: 16, 128>}]} {
    %c0 = arith.constant 0 : index
    %c0_0 = arith.constant 0 : index
    %0 = vector.load %arg1[%c0, %c0_0] : memref<16x768xbf16, #tpu.memory_space<vmem>>, vector<16x768xbf16>
    %c0_1 = arith.constant 0 : index
    %c0_2 = arith.constant 0 : index
    %1 = vector.load %arg2[%c0_1, %c0_2] : memref<768x512xbf16, #tpu.memory_space<vmem>>, vector<768x512xbf16>
    %cst = arith.constant dense<0.000000e+00> : vector<16x512xf32>
    %2 = tpu.matmul %0, %1, %cst {dimension_numbers = #tpu.dot_dimension_numbers<[1], [0], [0], [1], [0, 0, 1, 1], [], []>} : vector<16x768xbf16>, vector<768x512xbf16>, vector<16x512xf32> -> vector<16x512xf32>
    %c0_3 = arith.constant 0 : index
    %c0_4 = arith.constant 0 : index
    %3 = vector.load %arg3[%c0_3, %c0_4] : memref<1x512xf32, #tpu.memory_space<vmem>>, vector<1x512xf32>
    %4 = vector.broadcast %3 : vector<1x512xf32> to vector<16x512xf32>
    %5 = arith.addf %2, %4 : vector<16x512xf32>
    %cst_5 = arith.constant 0.000000e+00 : f32
    %6 = vector.broadcast %cst_5 : f32 to vector<16x512xf32>
    %7 = arith.maximumf %5, %6 : vector<16x512xf32>
    %8 = arith.truncf %7 : vector<16x512xf32> to vector<16x512xbf16>
    %c0_6 = arith.constant 0 : index
    %c0_7 = arith.constant 0 : index
    %9 = vector.load %arg4[%c0_6, %c0_7] : memref<512x128xbf16, #tpu.memory_space<vmem>>, vector<512x128xbf16>
    %cst_8 = arith.constant dense<0.000000e+00> : vector<16x128xf32>
    %10 = tpu.matmul %8, %9, %cst_8 {dimension_numbers = #tpu.dot_dimension_numbers<[1], [0], [0], [1], [0, 0, 1, 1], [], []>} : vector<16x512xbf16>, vector<512x128xbf16>, vector<16x128xf32> -> vector<16x128xf32>
    %c0_9 = arith.constant 0 : index
    %c0_10 = arith.constant 0 : index
    %11 = vector.load %arg5[%c0_9, %c0_10] : memref<1x128xf32, #tpu.memory_space<vmem>>, vector<1x128xf32>
    %12 = vector.broadcast %11 : vector<1x128xf32> to vector<16x128xf32>
    %13 = arith.addf %10, %12 : vector<16x128xf32>
    %cst_11 = arith.constant 0.000000e+00 : f32
    %14 = vector.broadcast %cst_11 : f32 to vector<16x128xf32>
    %15 = arith.maximumf %13, %14 : vector<16x128xf32>
    %16 = arith.truncf %15 : vector<16x128xf32> to vector<16x128xbf16>
    %c0_12 = arith.constant 0 : index
    %c0_13 = arith.constant 0 : index
    %17 = vector.load %arg6[%c0_12, %c0_13] : memref<128x128xbf16, #tpu.memory_space<vmem>>, vector<128x128xbf16>
    %cst_14 = arith.constant dense<0.000000e+00> : vector<16x128xf32>
    %18 = tpu.matmul %16, %17, %cst_14 {dimension_numbers = #tpu.dot_dimension_numbers<[1], [0], [0], [1], [0, 0, 1, 1], [], []>} : vector<16x128xbf16>, vector<128x128xbf16>, vector<16x128xf32> -> vector<16x128xf32>
    %c0_15 = arith.constant 0 : index
    %c0_16 = arith.constant 0 : index
    %19 = vector.load %arg7[%c0_15, %c0_16] : memref<1x128xf32, #tpu.memory_space<vmem>>, vector<1x128xf32>
    %20 = vector.broadcast %19 : vector<1x128xf32> to vector<16x128xf32>
    %21 = arith.addf %18, %20 : vector<16x128xf32>
    %cst_17 = arith.constant 0.000000e+00 : f32
    %22 = vector.broadcast %cst_17 : f32 to vector<16x128xf32>
    %23 = arith.maximumf %21, %22 : vector<16x128xf32>
    %24 = arith.truncf %23 : vector<16x128xf32> to vector<16x128xbf16>
    %c0_18 = arith.constant 0 : index
    %c0_19 = arith.constant 0 : index
    %25 = vector.load %arg8[%c0_18, %c0_19] : memref<128x128xbf16, #tpu.memory_space<vmem>>, vector<128x128xbf16>
    %cst_20 = arith.constant dense<0.000000e+00> : vector<16x128xf32>
    %26 = tpu.matmul %24, %25, %cst_20 {dimension_numbers = #tpu.dot_dimension_numbers<[1], [0], [0], [1], [0, 0, 1, 1], [], []>} : vector<16x128xbf16>, vector<128x128xbf16>, vector<16x128xf32> -> vector<16x128xf32>
    %c0_21 = arith.constant 0 : index
    %c0_22 = arith.constant 0 : index
    %27 = vector.load %arg9[%c0_21, %c0_22] : memref<1x128xf32, #tpu.memory_space<vmem>>, vector<1x128xf32>
    %28 = vector.broadcast %27 : vector<1x128xf32> to vector<16x128xf32>
    %29 = arith.addf %26, %28 : vector<16x128xf32>
    %30 = arith.truncf %29 : vector<16x128xf32> to vector<16x128xbf16>
    %c0_23 = arith.constant 0 : index
    %c0_24 = arith.constant 0 : index
    %31 = vector.load %arg10[%c0_23, %c0_24] : memref<16x128xbf16, #tpu.memory_space<vmem>>, vector<16x128xbf16>
    tpu.vector_store %arg10[%c0_23, %c0_24], %30 {strides = array<i32>} : memref<16x128xbf16, #tpu.memory_space<vmem>>, vector<16x128xbf16>,
    return
  }
  func.func @transform_0(%arg0: i32) -> (i32, i32) {
    %c0_i32 = arith.constant 0 : i32
    %c0_i32_0 = arith.constant 0 : i32
    return %arg0, %c0_i32 : i32, i32
  }
  func.func @transform_1(%arg0: i32) -> (i32, i32) {
    %c0_i32 = arith.constant 0 : i32
    %c0_i32_0 = arith.constant 0 : i32
    %c0_i32_1 = arith.constant 0 : i32
    return %c0_i32, %c0_i32_0 : i32, i32
  }
  func.func @transform_2(%arg0: i32) -> (i32, i32) {
    %c0_i32 = arith.constant 0 : i32
    %c0_i32_0 = arith.constant 0 : i32
    %c0_i32_1 = arith.constant 0 : i32
    return %c0_i32, %c0_i32_0 : i32, i32
  }
  func.func @transform_3(%arg0: i32) -> (i32, i32) {
    %c0_i32 = arith.constant 0 : i32
    %c0_i32_0 = arith.constant 0 : i32
    %c0_i32_1 = arith.constant 0 : i32
    return %c0_i32, %c0_i32_0 : i32, i32
  }
  func.func @transform_4(%arg0: i32) -> (i32, i32) {
    %c0_i32 = arith.constant 0 : i32
    %c0_i32_0 = arith.constant 0 : i32
    %c0_i32_1 = arith.constant 0 : i32
    return %c0_i32, %c0_i32_0 : i32, i32
  }
  func.func @transform_5(%arg0: i32) -> (i32, i32) {
    %c0_i32 = arith.constant 0 : i32
    %c0_i32_0 = arith.constant 0 : i32
    %c0_i32_1 = arith.constant 0 : i32
    return %c0_i32, %c0_i32_0 : i32, i32
  }
  func.func @transform_6(%arg0: i32) -> (i32, i32) {
    %c0_i32 = arith.constant 0 : i32
    %c0_i32_0 = arith.constant 0 : i32
    %c0_i32_1 = arith.constant 0 : i32
    return %c0_i32, %c0_i32_0 : i32, i32
  }
  func.func @transform_7(%arg0: i32) -> (i32, i32) {
    %c0_i32 = arith.constant 0 : i32
    %c0_i32_0 = arith.constant 0 : i32
    %c0_i32_1 = arith.constant 0 : i32
    return %c0_i32, %c0_i32_0 : i32, i32
  }
  func.func @transform_8(%arg0: i32) -> (i32, i32) {
    %c0_i32 = arith.constant 0 : i32
    %c0_i32_0 = arith.constant 0 : i32
    %c0_i32_1 = arith.constant 0 : i32
    return %c0_i32, %c0_i32_0 : i32, i32
  }
  func.func @transform_9(%arg0: i32) -> (i32, i32) {
    %c0_i32 = arith.constant 0 : i32
    %c0_i32_0 = arith.constant 0 : i32
    return %arg0, %c0_i32 : i32, i32
  }
}

</mosaic_0001>

<bundles_post_ra>
// kernel: tpu_custom_call.1
= control target key start
LH: loop header
LB: loop body
LE: loop exit
PB: predicated region body
PF: predicated region fallthrough
CT: control target
= control target key end

     0   :  { %14 = vsyncpa [#allocation3], 0  ;;  %s3247_s0 = inlined_call_operand.hbm [shape: bf16[16,768], index: 0, kind: input, shape index: {}]   ;;  %s3248_s1 = inlined_call_operand.hbm [shape: bf16[768,512], index: 1, kind: input, shape index: {}]   ;;  %s3249_s2 = inlined_call_operand.vmem [shape: f32[1,512], index: 2, kind: input, shape index: {}]   ;;  %s3250_s3 = inlined_call_operand.hbm [shape: bf16[512,128], index: 3, kind: input, shape index: {}]   ;;  %s3251_s4 = inlined_call_operand.vmem [shape: f32[1,128], index: 4, kind: input, shape index: {}]   ;;  %s3252_s5 = inlined_call_operand.hbm [shape: bf16[128,128], index: 5, kind: input, shape index: {}]   ;;  %s3253_s6 = inlined_call_operand.vmem [shape: f32[1,128], index: 6, kind: input, shape index: {}]   ;;  %s3254_s7 = inlined_call_operand.hbm [shape: bf16[128,128], index: 7, kind: input, shape index: {}]   ;;  %s3255_s8 = inlined_call_operand.vmem [shape: f32[1,128], index: 8, kind: input, shape index: {}]   ;;  %s3256_s9 = inlined_call_operand.hbm [shape: bf16[16,128], index: 9, kind: output, shape index: {}]  }
   0x1   :  { %15 = vsyncpa [#allocation6], 0 }
   0x2   :  { %16 = vsyncpa [#allocation9], 0 }
   0x3   :  { %17 = vsyncpa [#allocation4], 0  ;;  %s3069_s30 = smov [#allocation5]   ;;  %s2929_s13 = scalar_lea.hbm %s3248_s1, 24576 }
   0x4   :  { %s35_s10 = sshll.u32 %s3069_s30, 4  ;;  %p2930_p0 = scmp.ne.s32.totalorder %s3248_s1, %s2929_s13  ;;  %s36_s10 = int_to_ptr.vmem [resolvable:$true] %s35_s10 }
   0x5   :  { %p2933_p1 = scmp.lt.u32.totalorder %s2929_s13, %s3248_s1 }
   0x7   :  { %p2935_p2 = pnand %p2933_p1, %p2930_p0 }
   0x9   :  { %2938 = shalt.err (!%p2935_p2)
}
   0xa   :  { %s2939_s18 = scalar_lea.vmem %s36_s10, 24576  ;;  %p2944_p4 = scmp.lt.s32.totalorder %s36_s10, %s36_s10 }
   0xb   :  { %p2940_p3 = scmp.ne.s32.totalorder %s36_s10, %s2939_s18  ;;  %p2945_p5 = scmp.lt.s32.totalorder %s2939_s18, %s2939_s18 }
   0xd   :  { %p2946_p6 = por %p2945_p5, %p2944_p4 }
   0xf   :  { %p2947_p7 = pnand %p2946_p6, %p2940_p3 }
  0x11   :  { %2950 = shalt.err (!%p2947_p7)
}
  0x12   :  { %s3070_s19 = smov 256   ;;  %s3071_s20 = smov 16  }
  0x13   :  { %41 = dma.hbm_to_vmem [thread:$0]  %s3248_s1, 24576, %s36_s10, [#allocation6], %s3070_s19, %s3070_s19, %s3071_s20  }
  0x14   :  { %s3072_s23 = smov [#allocation8]   ;;  %s3073_s25 = smov [#allocation2]  }
  0x15   :  { %s63_s24 = sshll.u32 %s3072_s23, 4  ;;  %s23_s26 = sshll.u32 %s3073_s25, 4  ;;  %s64_s24 = int_to_ptr.vmem [resolvable:$true] %s63_s24  ;;  %s24_s26 = int_to_ptr.vmem [resolvable:$true] %s23_s26 }
  0x16   :  { %s2951_s29 = scalar_lea.hbm %s3252_s5, 1024 }
  0x17   :  { %p2952_p8 = scmp.ne.s32.totalorder %s3252_s5, %s2951_s29  ;;  %p2955_p9 = scmp.lt.u32.totalorder %s2951_s29, %s3252_s5 }
  0x19   :  { %p2957_p10 = pnand %p2955_p9, %p2952_p8 }
  0x1b   :  { %2960 = shalt.err (!%p2957_p10)
}
  0x1c   :  { %s2961_s1 = scalar_lea.vmem %s64_s24, 1024  ;;  %p2966_p12 = scmp.lt.s32.totalorder %s64_s24, %s64_s24 }
  0x1d   :  { %p2962_p11 = scmp.ne.s32.totalorder %s64_s24, %s2961_s1  ;;  %p2967_p13 = scmp.lt.s32.totalorder %s2961_s1, %s2961_s1 }
  0x1f   :  { %p2968_p0 = por %p2967_p13, %p2966_p12 }
  0x21   :  { %p2969_p1 = pnand %p2968_p0, %p2962_p11 }
  0x23   :  { %2972 = shalt.err (!%p2969_p1)
}
  0x24   :  { %s3074_s10 = smov 64   ;;  %s3075_s14 = smov 4  }
  0x25   :  { %69 = dma.hbm_to_vmem [thread:$0]  %s3252_s5, 1024, %s64_s24, [#allocation9], %s3074_s10, %s3074_s10, %s3075_s14  }
  0x26   :  { %s2973_s19 = scalar_lea.hbm %s3247_s0, 768 }
  0x27   :  { %p2974_p2 = scmp.ne.s32.totalorder %s3247_s0, %s2973_s19  ;;  %p2977_p3 = scmp.lt.u32.totalorder %s2973_s19, %s3247_s0 }
  0x29   :  { %p2979_p4 = pnand %p2977_p3, %p2974_p2 }
  0x2b   :  { %2982 = shalt.err (!%p2979_p4)
}
  0x2c   :  { %s2983_s25 = scalar_lea.vmem %s24_s26, 768  ;;  %p2988_p6 = scmp.lt.s32.totalorder %s24_s26, %s24_s26 }
  0x2d   :  { %p2984_p5 = scmp.ne.s32.totalorder %s24_s26, %s2983_s25  ;;  %p2989_p7 = scmp.lt.s32.totalorder %s2983_s25, %s2983_s25 }
  0x2f   :  { %p2990_p8 = por %p2989_p7, %p2988_p6 }
  0x31   :  { %p2991_p9 = pnand %p2990_p8, %p2984_p5 }
  0x33   :  { %2994 = shalt.err (!%p2991_p9)
}
  0x34   :  { %s3076_s5 = smov 384   ;;  %s3077_s24 = smov 24  }
  0x35   :  { %29 = dma.hbm_to_vmem [thread:$0]  %s3247_s0, 768, %s24_s26, [#allocation3], %s3076_s5, %s3076_s5, %s3077_s24  }
  0x36   :  { %s3078_s29 = smov [#allocation7]   ;;  %s3079_s11 = smov [#allocation10]  }
  0x37   :  { %s49_s30 = sshll.u32 %s3078_s29, 4  ;;  %s77_s12 = sshll.u32 %s3079_s11, 4  ;;  %s50_s30 = int_to_ptr.vmem [resolvable:$true] %s49_s30  ;;  %s78_s12 = int_to_ptr.vmem [resolvable:$true] %s77_s12 }
  0x38   :  { %s2995_s15 = scalar_lea.hbm %s3250_s3, 4096 }
  0x39   :  { %p2996_p10 = scmp.ne.s32.totalorder %s3250_s3, %s2995_s15  ;;  %p2999_p11 = scmp.lt.u32.totalorder %s2995_s15, %s3250_s3 }
  0x3b   :  { %p3001_p12 = pnand %p2999_p11, %p2996_p10 }
  0x3d   :  { %3004 = shalt.err (!%p3001_p12)
}
  0x3e   :  { %s3005_s0 = scalar_lea.vmem %s50_s30, 4096  ;;  %p3010_p0 = scmp.lt.s32.totalorder %s50_s30, %s50_s30 }
  0x3f   :  { %p3006_p13 = scmp.ne.s32.totalorder %s50_s30, %s3005_s0  ;;  %p3011_p1 = scmp.lt.s32.totalorder %s3005_s0, %s3005_s0 }
  0x41   :  { %p3012_p2 = por %p3011_p1, %p3010_p0 }
  0x43   :  { %p3013_p3 = pnand %p3012_p2, %p3006_p13 }
  0x45   :  { %3016 = shalt.err (!%p3013_p3)
}
  0x46   :  { %55 = dma.hbm_to_vmem [thread:$0]  %s3250_s3, 4096, %s50_s30, [#allocation6], %s3074_s10, %s3074_s10, %s3075_s14  }
  0x47   :  { %s3017_s23 = scalar_lea.hbm %s3254_s7, 1024 }
  0x48   :  { %p3018_p4 = scmp.ne.s32.totalorder %s3254_s7, %s3017_s23  ;;  %p3021_p5 = scmp.lt.u32.totalorder %s3017_s23, %s3254_s7 }
  0x4a   :  { %p3023_p6 = pnand %p3021_p5, %p3018_p4 }
  0x4c   :  { %3026 = shalt.err (!%p3023_p6)
}
  0x4d   :  { %s3027_s28 = scalar_lea.vmem %s78_s12, 1024  ;;  %p3032_p8 = scmp.lt.s32.totalorder %s78_s12, %s78_s12 }
  0x4e   :  { %p3028_p7 = scmp.ne.s32.totalorder %s78_s12, %s3027_s28  ;;  %p3033_p9 = scmp.lt.s32.totalorder %s3027_s28, %s3027_s28 }
  0x50   :  { %p3034_p10 = por %p3033_p9, %p3032_p8 }
  0x52   :  { %p3035_p11 = pnand %p3034_p10, %p3028_p7 }
  0x54   :  { %3038 = shalt.err (!%p3035_p11)
}
  0x55   :  { %83 = dma.hbm_to_vmem [thread:$0]  %s3254_s7, 1024, %s78_s12, [#allocation9], %s3074_s10, %s3074_s10, %s3075_s14  }
  0x56   :  { %3061 = dma.done.wait [#allocation3], 768  }
  0x57   :  { %3062 = vsyncadd [#allocation3], 4294966528 }
  0x58   :  { %3063 = dma.done.wait [#allocation6], 28672  }
  0x59   :  { %3064 = vsyncadd [#allocation6], 4294938624 }
  0x5a   :  { %3065 = dma.done.wait [#allocation9], 2048  }
  0x5b   :  { %3066 = vsyncadd [#allocation9], 4294965248  ;;  %v2584_v0 = vld [vmem:[#allocation5 + $0x4] ss:$16 sps:$4 sm:$0xff]   ;;  %v2586_v1 = vld [vmem:[#allocation5 + $0xc] ss:$16 sps:$4 sm:$0xff]  }
  0x5c   :  { %1312 = vmatprep.subr.bf16.mxu0 %v2584_v0  ;;  %v2588_v2 = vld [vmem:[#allocation5] ss:$16 sps:$4 sm:$0xff]   ;;  %v2589_v3 = vld [vmem:[#allocation5 + $0x8] ss:$16 sps:$4 sm:$0xff]   ;;  %1441 = vmatprep.subr.bf16.mxu1 %v2586_v1  ;;  %v2590_v4 = vld [vmem:[#allocation5 + $0x24] ss:$16 sps:$4 sm:$0xff]  }
  0x5d   :  { %1313 = vmatpush1.bf16.msra.mxu0 %v2588_v2  ;;  %1442 = vmatpush1.bf16.msra.mxu1 %v2589_v3  ;;  %v2592_v5 = vld [vmem:[#allocation5 + $0x2c] ss:$16 sps:$4 sm:$0xff]   ;;  %v2594_v6 = vld [vmem:[#allocation5 + $0x20] ss:$16 sps:$4 sm:$0xff]   ;;  %v2595_v7 = vld [vmem:[#allocation5 + $0x28] ss:$16 sps:$4 sm:$0xff]  }
  0x5e   :  { %1314 = vmatprep.subr.bf16.mxu0 %v2590_v4  ;;  %1443 = vmatprep.subr.bf16.mxu1 %v2592_v5  ;;  %v2596_v8 = vld [vmem:[#allocation5 + $0x44] ss:$16 sps:$4 sm:$0xff]   ;;  %v2598_v9 = vld [vmem:[#allocation5 + $0x4c] ss:$16 sps:$4 sm:$0xff]   ;;  %v2600_v10 = vld [vmem:[#allocation5 + $0x40] ss:$16 sps:$4 sm:$0xff]  }
  0x5f   :  { %v2601_v11 = vld [vmem:[#allocation5 + $0x48] ss:$16 sps:$4 sm:$0xff]   ;;  %v2602_v12 = vld [vmem:[#allocation5 + $0x64] ss:$16 sps:$4 sm:$0xff]   ;;  %v2604_v13 = vld [vmem:[#allocation5 + $0x6c] ss:$16 sps:$4 sm:$0xff]  }
  0x60   :  { %v2606_v14 = vld [vmem:[#allocation5 + $0x60] ss:$16 sps:$4 sm:$0xff]   ;;  %v2607_v15 = vld [vmem:[#allocation5 + $0x68] ss:$16 sps:$4 sm:$0xff]   ;;  %v2608_v16 = vld [vmem:[#allocation5 + $0x84] ss:$16 sps:$4 sm:$0xff]  }
  0x61   :  { %1315 = vmatpush1.bf16.msra.mxu0 %v2594_v6  ;;  %1444 = vmatpush1.bf16.msra.mxu1 %v2595_v7  ;;  %v2610_v17 = vld [vmem:[#allocation5 + $0x8c] ss:$16 sps:$4 sm:$0xff]   ;;  %v2612_v18 = vld [vmem:[#allocation5 + $0x80] ss:$16 sps:$4 sm:$0xff]   ;;  %v2613_v19 = vld [vmem:[#allocation5 + $0x88] ss:$16 sps:$4 sm:$0xff]  }
  0x62   :  { %1316 = vmatprep.subr.bf16.mxu0 %v2596_v8  ;;  %1445 = vmatprep.subr.bf16.mxu1 %v2598_v9  ;;  %v2614_v20 = vld [vmem:[#allocation5 + $0xa4] ss:$16 sps:$4 sm:$0xff]   ;;  %v2616_v21 = vld [vmem:[#allocation5 + $0xac] ss:$16 sps:$4 sm:$0xff]   ;;  %v2618_v22 = vld [vmem:[#allocation5 + $0xa0] ss:$16 sps:$4 sm:$0xff]  }
  0x63   :  { %v2619_v23 = vld [vmem:[#allocation5 + $0xa8] ss:$16 sps:$4 sm:$0xff]   ;;  %v2620_v24 = vld [vmem:[#allocation5 + $0xc4] ss:$16 sps:$4 sm:$0xff]   ;;  %v2622_v25 = vld [vmem:[#allocation5 + $0xcc] ss:$16 sps:$4 sm:$0xff]  }
  0x64   :  { %v2624_v26 = vld [vmem:[#allocation5 + $0xc0] ss:$16 sps:$4 sm:$0xff]   ;;  %v2625_v27 = vld [vmem:[#allocation5 + $0xc8] ss:$16 sps:$4 sm:$0xff]   ;;  %v2626_v28 = vld [vmem:[#allocation5 + $0xe4] ss:$16 sps:$4 sm:$0xff]  }
  0x65   :  { %1317 = vmatpush1.bf16.msra.mxu0 %v2600_v10  ;;  %1446 = vmatpush1.bf16.msra.mxu1 %v2601_v11  ;;  %v2628_v29 = vld [vmem:[#allocation5 + $0xec] ss:$16 sps:$4 sm:$0xff]   ;;  %v2630_v30 = vld [vmem:[#allocation5 + $0xe0] ss:$16 sps:$4 sm:$0xff]   ;;  %v2631_v31 = vld [vmem:[#allocation5 + $0xe8] ss:$16 sps:$4 sm:$0xff]  }
  0x66   :  { %1318 = vmatprep.subr.bf16.mxu0 %v2602_v12  ;;  %1447 = vmatprep.subr.bf16.mxu1 %v2604_v13  ;;  %v2632_v32 = vld [vmem:[#allocation5 + $0x104] ss:$16 sps:$4 sm:$0xff]   ;;  %v2634_v33 = vld [vmem:[#allocation5 + $0x10c] ss:$16 sps:$4 sm:$0xff]   ;;  %v2636_v34 = vld [vmem:[#allocation5 + $0x100] ss:$16 sps:$4 sm:$0xff]  }
  0x67   :  { %v2637_v35 = vld [vmem:[#allocation5 + $0x108] ss:$16 sps:$4 sm:$0xff]   ;;  %v2638_v36 = vld [vmem:[#allocation5 + $0x124] ss:$16 sps:$4 sm:$0xff]   ;;  %v2640_v37 = vld [vmem:[#allocation5 + $0x12c] ss:$16 sps:$4 sm:$0xff]  }
  0x68   :  { %v2642_v38 = vld [vmem:[#allocation5 + $0x120] ss:$16 sps:$4 sm:$0xff]   ;;  %v2643_v39 = vld [vmem:[#allocation5 + $0x128] ss:$16 sps:$4 sm:$0xff]   ;;  %v2644_v40 = vld [vmem:[#allocation5 + $0x144] ss:$16 sps:$4 sm:$0xff]  }
  0x69   :  { %1319 = vmatpush1.bf16.msra.mxu0 %v2606_v14  ;;  %1448 = vmatpush1.bf16.msra.mxu1 %v2607_v15  ;;  %v2646_v41 = vld [vmem:[#allocation5 + $0x14c] ss:$16 sps:$4 sm:$0xff]   ;;  %v2648_v42 = vld [vmem:[#allocation5 + $0x140] ss:$16 sps:$4 sm:$0xff]   ;;  %v2649_v43 = vld [vmem:[#allocation5 + $0x148] ss:$16 sps:$4 sm:$0xff]  }
  0x6a   :  { %1320 = vmatprep.subr.bf16.mxu0 %v2608_v16  ;;  %1449 = vmatprep.subr.bf16.mxu1 %v2610_v17  ;;  %v2650_v44 = vld [vmem:[#allocation5 + $0x164] ss:$16 sps:$4 sm:$0xff]   ;;  %v2652_v45 = vld [vmem:[#allocation5 + $0x16c] ss:$16 sps:$4 sm:$0xff]   ;;  %v2654_v46 = vld [vmem:[#allocation5 + $0x160] ss:$16 sps:$4 sm:$0xff]  }
  0x6b   :  { %v2655_v47 = vld [vmem:[#allocation5 + $0x168] ss:$16 sps:$4 sm:$0xff]   ;;  %v2682_v48 = vld [vmem:[#allocation2 + $0x4] ss:$24 sps:$4 sm:$0xff]   ;;  %v2660_v51 = vld [vmem:[#allocation5 + $0x180] ss:$16 sps:$4 sm:$0xff]  }
  0x6c   :  { %v2656_v49 = vld [vmem:[#allocation5 + $0x184] ss:$16 sps:$4 sm:$0xff]   ;;  %v2658_v50 = vld [vmem:[#allocation5 + $0x18c] ss:$16 sps:$4 sm:$0xff]   ;;  %1344 = vmatprep.mubr.bf16.mxu0 %v2682_v48  ;;  %1473 = vmatprep.mubr.bf16.mxu1 %v2682_v48  ;;  %v2661_v52 = vld [vmem:[#allocation5 + $0x188] ss:$16 sps:$4 sm:$0xff]  }
  0x6d   :  { %1321 = vmatpush1.bf16.msra.mxu0 %v2612_v18  ;;  %1450 = vmatpush1.bf16.msra.mxu1 %v2613_v19  ;;  %v2662_v53 = vld [vmem:[#allocation5 + $0x1a4] ss:$16 sps:$4 sm:$0xff]   ;;  %v2664_v54 = vld [vmem:[#allocation5 + $0x1ac] ss:$16 sps:$4 sm:$0xff]   ;;  %v2666_v55 = vld [vmem:[#allocation5 + $0x1a0] ss:$16 sps:$4 sm:$0xff]  }
  0x6e   :  { %1322 = vmatprep.subr.bf16.mxu0 %v2614_v20  ;;  %1451 = vmatprep.subr.bf16.mxu1 %v2616_v21  ;;  %v2667_v56 = vld [vmem:[#allocation5 + $0x1a8] ss:$16 sps:$4 sm:$0xff]   ;;  %v2668_v57 = vld [vmem:[#allocation5 + $0x1c4] ss:$16 sps:$4 sm:$0xff]   ;;  %v2670_v58 = vld [vmem:[#allocation5 + $0x1cc] ss:$16 sps:$4 sm:$0xff]  }
  0x6f   :  { %v2672_v59 = vld [vmem:[#allocation5 + $0x1c0] ss:$16 sps:$4 sm:$0xff]   ;;  %v2673_v60 = vld [vmem:[#allocation5 + $0x1c8] ss:$16 sps:$4 sm:$0xff]   ;;  %v2674_v61 = vld [vmem:[#allocation5 + $0x1e4] ss:$16 sps:$4 sm:$0xff]  }
  0x70   :  { %v2676_v62 = vld [vmem:[#allocation5 + $0x1ec] ss:$16 sps:$4 sm:$0xff]   ;;  %v2678_v63 = vld [vmem:[#allocation5 + $0x1e0] ss:$16 sps:$4 sm:$0xff]   ;;  %v2679_v0 = vld [vmem:[#allocation5 + $0x1e8] ss:$16 sps:$4 sm:$0xff]  }
  0x71   :  { %1323 = vmatpush1.bf16.msra.mxu0 %v2618_v22  ;;  %1452 = vmatpush1.bf16.msra.mxu1 %v2619_v23  ;;  %v2685_v1 = vld [vmem:[#allocation5 + $0x204] ss:$16 sps:$4 sm:$0xff]   ;;  %v2688_v2 = vld [vmem:[#allocation5 + $0x20c] ss:$16 sps:$4 sm:$0xff]   ;;  %v2680_v3 = vld [vmem:[#allocation2] ss:$24 sps:$4 sm:$0xff]  }
  0x72   :  { %1324 = vmatprep.subr.bf16.mxu0 %v2620_v24  ;;  %1453 = vmatprep.subr.bf16.mxu1 %v2622_v25  ;;  %v2683_v4 = vld [vmem:[#allocation5 + $0x200] ss:$16 sps:$4 sm:$0xff]   ;;  %v2686_v5 = vld [vmem:[#allocation5 + $0x208] ss:$16 sps:$4 sm:$0xff]   ;;  %v2691_v6 = vld [vmem:[#allocation5 + $0x224] ss:$16 sps:$4 sm:$0xff]  }
  0x73   :  { %v2694_v7 = vld [vmem:[#allocation5 + $0x22c] ss:$16 sps:$4 sm:$0xff]   ;;  %v2689_v8 = vld [vmem:[#allocation5 + $0x220] ss:$16 sps:$4 sm:$0xff]   ;;  %v2692_v9 = vld [vmem:[#allocation5 + $0x228] ss:$16 sps:$4 sm:$0xff]  }
  0x74   :  { %v2697_v10 = vld [vmem:[#allocation5 + $0x244] ss:$16 sps:$4 sm:$0xff]   ;;  %v2700_v11 = vld [vmem:[#allocation5 + $0x24c] ss:$16 sps:$4 sm:$0xff]   ;;  %v2695_v12 = vld [vmem:[#allocation5 + $0x240] ss:$16 sps:$4 sm:$0xff]  }
  0x75   :  { %1325 = vmatpush1.bf16.msra.mxu0 %v2624_v26  ;;  %1454 = vmatpush1.bf16.msra.mxu1 %v2625_v27  ;;  %v2698_v13 = vld [vmem:[#allocation5 + $0x248] ss:$16 sps:$4 sm:$0xff]   ;;  %v2703_v14 = vld [vmem:[#allocation5 + $0x264] ss:$16 sps:$4 sm:$0xff]   ;;  %v2706_v15 = vld [vmem:[#allocation5 + $0x26c] ss:$16 sps:$4 sm:$0xff]  }
  0x76   :  { %1326 = vmatprep.subr.bf16.mxu0 %v2626_v28  ;;  %1455 = vmatprep.subr.bf16.mxu1 %v2628_v29  ;;  %v2701_v16 = vld [vmem:[#allocation5 + $0x260] ss:$16 sps:$4 sm:$0xff]   ;;  %v2704_v17 = vld [vmem:[#allocation5 + $0x268] ss:$16 sps:$4 sm:$0xff]   ;;  %v2709_v18 = vld [vmem:[#allocation5 + $0x284] ss:$16 sps:$4 sm:$0xff]  }
  0x77   :  { %v2712_v19 = vld [vmem:[#allocation5 + $0x28c] ss:$16 sps:$4 sm:$0xff]   ;;  %v2707_v20 = vld [vmem:[#allocation5 + $0x280] ss:$16 sps:$4 sm:$0xff]   ;;  %v2710_v21 = vld [vmem:[#allocation5 + $0x288] ss:$16 sps:$4 sm:$0xff]  }
  0x78   :  { %v2715_v22 = vld [vmem:[#allocation5 + $0x2a4] ss:$16 sps:$4 sm:$0xff]   ;;  %v2718_v23 = vld [vmem:[#allocation5 + $0x2ac] ss:$16 sps:$4 sm:$0xff]   ;;  %v2713_v24 = vld [vmem:[#allocation5 + $0x2a0] ss:$16 sps:$4 sm:$0xff]  }
  0x79   :  { %1327 = vmatpush1.bf16.msra.mxu0 %v2630_v30  ;;  %1456 = vmatpush1.bf16.msra.mxu1 %v2631_v31  ;;  %v2716_v25 = vld [vmem:[#allocation5 + $0x2a8] ss:$16 sps:$4 sm:$0xff]   ;;  %v2721_v26 = vld [vmem:[#allocation5 + $0x2c4] ss:$16 sps:$4 sm:$0xff]   ;;  %v2724_v27 = vld [vmem:[#allocation5 + $0x2cc] ss:$16 sps:$4 sm:$0xff]  }
  0x7a   :  { %1328 = vmatprep.subr.bf16.mxu0 %v2632_v32  ;;  %1457 = vmatprep.subr.bf16.mxu1 %v2634_v33  ;;  %v2719_v28 = vld [vmem:[#allocation5 + $0x2c0] ss:$16 sps:$4 sm:$0xff]   ;;  %v2722_v29 = vld [vmem:[#allocation5 + $0x2c8] ss:$16 sps:$4 sm:$0xff]   ;;  %v2781_v30 = vld [vmem:[#allocation2 + $0xc] ss:$24 sps:$4 sm:$0xff]  }
  0x7b   :  { %v2727_v31 = vld [vmem:[#allocation5 + $0x2e4] ss:$16 sps:$4 sm:$0xff]   ;;  %v2730_v32 = vld [vmem:[#allocation5 + $0x2ec] ss:$16 sps:$4 sm:$0xff]   ;;  %v2725_v33 = vld [vmem:[#allocation5 + $0x2e0] ss:$16 sps:$4 sm:$0xff]  }
  0x7c   :  { %v2754_v48 = vld [vmem:[#allocation5 + $0x36c] ss:$16 sps:$4 sm:$0xff]   ;;  %vm3081_vm0 = vmmov 0   ;;  %s3082_s15 = smov [#allocation11]  }
  0x7d   :  { %1329 = vmatpush1.bf16.msra.mxu0 %v2636_v34  ;;  %1458 = vmatpush1.bf16.msra.mxu1 %v2637_v35  ;;  %v2728_v34 = vld [vmem:[#allocation5 + $0x2e8] ss:$16 sps:$4 sm:$0xff]   ;;  %v2733_v35 = vld [vmem:[#allocation5 + $0x304] ss:$16 sps:$4 sm:$0xff]   ;;  %s2172_s16 = sshll.u32 %s3082_s15, 4  ;;  %s2173_s16 = int_to_ptr.vmem [resolvable:$true] %s2172_s16 }
  0x7e   :  { %1330 = vmatprep.subr.bf16.mxu0 %v2638_v36  ;;  %1459 = vmatprep.subr.bf16.mxu1 %v2640_v37  ;;  %v2736_v36 = vld [vmem:[#allocation5 + $0x30c] ss:$16 sps:$4 sm:$0xff]   ;;  %v2731_v37 = vld [vmem:[#allocation5 + $0x300] ss:$16 sps:$4 sm:$0xff]   ;;  %p3044_p13 = scmp.lt.s32.totalorder %s2173_s16, %s2173_s16 }
  0x81   :  { %1331 = vmatpush1.bf16.msra.mxu0 %v2642_v38  ;;  %1460 = vmatpush1.bf16.msra.mxu1 %v2643_v39  ;;  %v2734_v38 = vld [vmem:[#allocation5 + $0x308] ss:$16 sps:$4 sm:$0xff]   ;;  %v2739_v39 = vld [vmem:[#allocation5 + $0x324] ss:$16 sps:$4 sm:$0xff]  }
  0x82   :  { %1332 = vmatprep.subr.bf16.mxu0 %v2644_v40  ;;  %1461 = vmatprep.subr.bf16.mxu1 %v2646_v41  ;;  %v2742_v40 = vld [vmem:[#allocation5 + $0x32c] ss:$16 sps:$4 sm:$0xff]   ;;  %v2737_v41 = vld [vmem:[#allocation5 + $0x320] ss:$16 sps:$4 sm:$0xff]  }
  0x85   :  { %1333 = vmatpush1.bf16.msra.mxu0 %v2648_v42  ;;  %1462 = vmatpush1.bf16.msra.mxu1 %v2649_v43  ;;  %v2740_v42 = vld [vmem:[#allocation5 + $0x328] ss:$16 sps:$4 sm:$0xff]   ;;  %v2745_v43 = vld [vmem:[#allocation5 + $0x344] ss:$16 sps:$4 sm:$0xff]  }
  0x86   :  { %1334 = vmatprep.subr.bf16.mxu0 %v2650_v44  ;;  %1463 = vmatprep.subr.bf16.mxu1 %v2652_v45  ;;  %v2748_v44 = vld [vmem:[#allocation5 + $0x34c] ss:$16 sps:$4 sm:$0xff]   ;;  %v2743_v45 = vld [vmem:[#allocation5 + $0x340] ss:$16 sps:$4 sm:$0xff]  }
  0x89   :  { %1335 = vmatpush1.bf16.msra.mxu0 %v2654_v46  ;;  %1464 = vmatpush1.bf16.msra.mxu1 %v2655_v47  ;;  %v2746_v46 = vld [vmem:[#allocation5 + $0x348] ss:$16 sps:$4 sm:$0xff]   ;;  %v2751_v47 = vld [vmem:[#allocation5 + $0x364] ss:$16 sps:$4 sm:$0xff]  }
  0x8a   :  { %1336 = vmatprep.subr.bf16.mxu0 %v2656_v49  ;;  %1465 = vmatprep.subr.bf16.mxu1 %v2658_v50  ;;  %v2749_v49 = vld [vmem:[#allocation5 + $0x360] ss:$16 sps:$4 sm:$0xff]   ;;  %v2752_v50 = vld [vmem:[#allocation5 + $0x368] ss:$16 sps:$4 sm:$0xff]  }
  0x8d   :  { %1337 = vmatpush1.bf16.msra.mxu0 %v2660_v51  ;;  %1466 = vmatpush1.bf16.msra.mxu1 %v2661_v52  ;;  %v2757_v51 = vld [vmem:[#allocation5 + $0x384] ss:$16 sps:$4 sm:$0xff]   ;;  %v2760_v52 = vld [vmem:[#allocation5 + $0x38c] ss:$16 sps:$4 sm:$0xff]  }
  0x8e   :  { %1338 = vmatprep.subr.bf16.mxu0 %v2662_v53  ;;  %1467 = vmatprep.subr.bf16.mxu1 %v2664_v54  ;;  %v2755_v53 = vld [vmem:[#allocation5 + $0x380] ss:$16 sps:$4 sm:$0xff]   ;;  %v2758_v54 = vld [vmem:[#allocation5 + $0x388] ss:$16 sps:$4 sm:$0xff]  }
  0x91   :  { %1339 = vmatpush1.bf16.msra.mxu0 %v2666_v55  ;;  %1468 = vmatpush1.bf16.msra.mxu1 %v2667_v56  ;;  %v2763_v55 = vld [vmem:[#allocation5 + $0x3a4] ss:$16 sps:$4 sm:$0xff]   ;;  %v2766_v56 = vld [vmem:[#allocation5 + $0x3ac] ss:$16 sps:$4 sm:$0xff]  }
  0x92   :  { %1340 = vmatprep.subr.bf16.mxu0 %v2668_v57  ;;  %1469 = vmatprep.subr.bf16.mxu1 %v2670_v58  ;;  %v2761_v57 = vld [vmem:[#allocation5 + $0x3a0] ss:$16 sps:$4 sm:$0xff]   ;;  %v2764_v58 = vld [vmem:[#allocation5 + $0x3a8] ss:$16 sps:$4 sm:$0xff]  }
  0x95   :  { %1341 = vmatpush1.bf16.msra.mxu0 %v2672_v59  ;;  %1470 = vmatpush1.bf16.msra.mxu1 %v2673_v60  ;;  %v2769_v59 = vld [vmem:[#allocation5 + $0x3c4] ss:$16 sps:$4 sm:$0xff]   ;;  %v2772_v60 = vld [vmem:[#allocation5 + $0x3cc] ss:$16 sps:$4 sm:$0xff]  }
  0x96   :  { %1342 = vmatprep.subr.bf16.mxu0 %v2674_v61  ;;  %1471 = vmatprep.subr.bf16.mxu1 %v2676_v62  ;;  %v2767_v61 = vld [vmem:[#allocation5 + $0x3c0] ss:$16 sps:$4 sm:$0xff]   ;;  %v2770_v62 = vld [vmem:[#allocation5 + $0x3c8] ss:$16 sps:$4 sm:$0xff]  }
  0x99   :  { %1343 = vmatpush1.bf16.msra.mxu0 %v2678_v63  ;;  %1472 = vmatpush1.bf16.msra.mxu1 %v2679_v0  ;;  %v2775_v63 = vld [vmem:[#allocation5 + $0x3e4] ss:$16 sps:$4 sm:$0xff]   ;;  %v2778_v0 = vld [vmem:[#allocation5 + $0x3ec] ss:$16 sps:$4 sm:$0xff]  }
  0x9a   :  { %1355 = vmatprep.subr.bf16.mxu0 %v2685_v1  ;;  %1484 = vmatprep.subr.bf16.mxu1 %v2688_v2  ;;  %v2773_v1 = vld [vmem:[#allocation5 + $0x3e0] ss:$16 sps:$4 sm:$0xff]   ;;  %v2776_v2 = vld [vmem:[#allocation5 + $0x3e8] ss:$16 sps:$4 sm:$0xff]  }
  0x9c   :  { %1345 = vmatmul.mubr.bf16.vlgmr.msra.gmra.mrb[0].mxu0 %v2680_v3  ;;  %1474 = vmatmul.mubr.bf16.vlgmr.msra.gmra.mrb[0].mxu1 %v2680_v3  ;;  %v2784_v3 = vld [vmem:[#allocation5 + $0x404] ss:$16 sps:$4 sm:$0xff]  }
  0x9d   :  { %1356 = vmatpush1.bf16.msra.mxu0 %v2683_v4  ;;  %1485 = vmatpush1.bf16.msra.mxu1 %v2686_v5  ;;  %v2787_v4 = vld [vmem:[#allocation5 + $0x40c] ss:$16 sps:$4 sm:$0xff]   ;;  %v2779_v5 = vld [vmem:[#allocation2 + $0x8] ss:$24 sps:$4 sm:$0xff]  }
  0x9e   :  { %1357 = vmatprep.subr.bf16.mxu0 %v2691_v6  ;;  %1486 = vmatprep.subr.bf16.mxu1 %v2694_v7  ;;  %v2782_v6 = vld [vmem:[#allocation5 + $0x400] ss:$16 sps:$4 sm:$0xff]   ;;  %v2785_v7 = vld [vmem:[#allocation5 + $0x408] ss:$16 sps:$4 sm:$0xff]  }
  0x9f   :  { %1387 = vmatprep.mubr.bf16.mxu0 %v2781_v30  ;;  %1516 = vmatprep.mubr.bf16.mxu1 %v2781_v30  ;;  %v2823_v30 = vld [vmem:[#allocation5 + $0x4cc] ss:$16 sps:$4 sm:$0xff]  }
  0xa1   :  { %1358 = vmatpush1.bf16.msra.mxu0 %v2689_v8  ;;  %1487 = vmatpush1.bf16.msra.mxu1 %v2692_v9  ;;  %v2790_v8 = vld [vmem:[#allocation5 + $0x424] ss:$16 sps:$4 sm:$0xff]   ;;  %v2793_v9 = vld [vmem:[#allocation5 + $0x42c] ss:$16 sps:$4 sm:$0xff]  }
  0xa2   :  { %1359 = vmatprep.subr.bf16.mxu0 %v2697_v10  ;;  %1488 = vmatprep.subr.bf16.mxu1 %v2700_v11  ;;  %v2788_v10 = vld [vmem:[#allocation5 + $0x420] ss:$16 sps:$4 sm:$0xff]   ;;  %v2791_v11 = vld [vmem:[#allocation5 + $0x428] ss:$16 sps:$4 sm:$0xff]  }
  0xa5   :  { %1360 = vmatpush1.bf16.msra.mxu0 %v2695_v12  ;;  %1489 = vmatpush1.bf16.msra.mxu1 %v2698_v13  ;;  %v2880_v12 = vld [vmem:[#allocation2 + $0x14] ss:$24 sps:$4 sm:$0xff]  }
  0xa6   :  { %1361 = vmatprep.subr.bf16.mxu0 %v2703_v14  ;;  %1490 = vmatprep.subr.bf16.mxu1 %v2706_v15  ;;  %v2796_v13 = vld [vmem:[#allocation5 + $0x444] ss:$16 sps:$4 sm:$0xff]   ;;  %v2799_v14 = vld [vmem:[#allocation5 + $0x44c] ss:$16 sps:$4 sm:$0xff]   ;;  %v2794_v15 = vld [vmem:[#allocation5 + $0x440] ss:$16 sps:$4 sm:$0xff]  }
  0xa9   :  { %1362 = vmatpush1.bf16.msra.mxu0 %v2701_v16  ;;  %1491 = vmatpush1.bf16.msra.mxu1 %v2704_v17  ;;  %v2797_v16 = vld [vmem:[#allocation5 + $0x448] ss:$16 sps:$4 sm:$0xff]   ;;  %v2802_v17 = vld [vmem:[#allocation5 + $0x464] ss:$16 sps:$4 sm:$0xff]  }
  0xaa   :  { %1363 = vmatprep.subr.bf16.mxu0 %v2709_v18  ;;  %1492 = vmatprep.subr.bf16.mxu1 %v2712_v19  ;;  %v2805_v18 = vld [vmem:[#allocation5 + $0x46c] ss:$16 sps:$4 sm:$0xff]   ;;  %v2800_v19 = vld [vmem:[#allocation5 + $0x460] ss:$16 sps:$4 sm:$0xff]  }
  0xad   :  { %1364 = vmatpush1.bf16.msra.mxu0 %v2707_v20  ;;  %1493 = vmatpush1.bf16.msra.mxu1 %v2710_v21  ;;  %v2803_v20 = vld [vmem:[#allocation5 + $0x468] ss:$16 sps:$4 sm:$0xff]   ;;  %v2808_v21 = vld [vmem:[#allocation5 + $0x484] ss:$16 sps:$4 sm:$0xff]  }
  0xae   :  { %1365 = vmatprep.subr.bf16.mxu0 %v2715_v22  ;;  %1494 = vmatprep.subr.bf16.mxu1 %v2718_v23  ;;  %v2811_v22 = vld [vmem:[#allocation5 + $0x48c] ss:$16 sps:$4 sm:$0xff]   ;;  %v2806_v23 = vld [vmem:[#allocation5 + $0x480] ss:$16 sps:$4 sm:$0xff]  }
  0xb1   :  { %1366 = vmatpush1.bf16.msra.mxu0 %v2713_v24  ;;  %1495 = vmatpush1.bf16.msra.mxu1 %v2716_v25  ;;  %v2809_v24 = vld [vmem:[#allocation5 + $0x488] ss:$16 sps:$4 sm:$0xff]   ;;  %v2814_v25 = vld [vmem:[#allocation5 + $0x4a4] ss:$16 sps:$4 sm:$0xff]  }
  0xb2   :  { %1367 = vmatprep.subr.bf16.mxu0 %v2721_v26  ;;  %1496 = vmatprep.subr.bf16.mxu1 %v2724_v27  ;;  %v2817_v26 = vld [vmem:[#allocation5 + $0x4ac] ss:$16 sps:$4 sm:$0xff]   ;;  %v2812_v27 = vld [vmem:[#allocation5 + $0x4a0] ss:$16 sps:$4 sm:$0xff]  }
  0xb5   :  { %1368 = vmatpush1.bf16.msra.mxu0 %v2719_v28  ;;  %1497 = vmatpush1.bf16.msra.mxu1 %v2722_v29  ;;  %v2815_v28 = vld [vmem:[#allocation5 + $0x4a8] ss:$16 sps:$4 sm:$0xff]   ;;  %v2820_v29 = vld [vmem:[#allocation5 + $0x4c4] ss:$16 sps:$4 sm:$0xff]  }
  0xb6   :  { %1369 = vmatprep.subr.bf16.mxu0 %v2727_v31  ;;  %1498 = vmatprep.subr.bf16.mxu1 %v2730_v32  ;;  %v2818_v31 = vld [vmem:[#allocation5 + $0x4c0] ss:$16 sps:$4 sm:$0xff]   ;;  %v2821_v32 = vld [vmem:[#allocation5 + $0x4c8] ss:$16 sps:$4 sm:$0xff]  }
  0xb9   :  { %1370 = vmatpush1.bf16.msra.mxu0 %v2725_v33  ;;  %1499 = vmatpush1.bf16.msra.mxu1 %v2728_v34  ;;  %v2826_v33 = vld [vmem:[#allocation5 + $0x4e4] ss:$16 sps:$4 sm:$0xff]   ;;  %v2829_v34 = vld [vmem:[#allocation5 + $0x4ec] ss:$16 sps:$4 sm:$0xff]  }
  0xba   :  { %1371 = vmatprep.subr.bf16.mxu0 %v2733_v35  ;;  %1500 = vmatprep.subr.bf16.mxu1 %v2736_v36  ;;  %v2824_v35 = vld [vmem:[#allocation5 + $0x4e0] ss:$16 sps:$4 sm:$0xff]   ;;  %v2827_v36 = vld [vmem:[#allocation5 + $0x4e8] ss:$16 sps:$4 sm:$0xff]  }
  0xbd   :  { %1372 = vmatpush1.bf16.msra.mxu0 %v2731_v37  ;;  %1501 = vmatpush1.bf16.msra.mxu1 %v2734_v38  ;;  %v2832_v37 = vld [vmem:[#allocation5 + $0x504] ss:$16 sps:$4 sm:$0xff]   ;;  %v2835_v38 = vld [vmem:[#allocation5 + $0x50c] ss:$16 sps:$4 sm:$0xff]  }
  0xbe   :  { %1373 = vmatprep.subr.bf16.mxu0 %v2739_v39  ;;  %1502 = vmatprep.subr.bf16.mxu1 %v2742_v40  ;;  %v2830_v39 = vld [vmem:[#allocation5 + $0x500] ss:$16 sps:$4 sm:$0xff]   ;;  %v2833_v40 = vld [vmem:[#allocation5 + $0x508] ss:$16 sps:$4 sm:$0xff]  }
  0xc1   :  { %1374 = vmatpush1.bf16.msra.mxu0 %v2737_v41  ;;  %1503 = vmatpush1.bf16.msra.mxu1 %v2740_v42  ;;  %v2838_v41 = vld [vmem:[#allocation5 + $0x524] ss:$16 sps:$4 sm:$0xff]   ;;  %v2841_v42 = vld [vmem:[#allocation5 + $0x52c] ss:$16 sps:$4 sm:$0xff]  }
  0xc2   :  { %1375 = vmatprep.subr.bf16.mxu0 %v2745_v43  ;;  %1504 = vmatprep.subr.bf16.mxu1 %v2748_v44  ;;  %v2836_v43 = vld [vmem:[#allocation5 + $0x520] ss:$16 sps:$4 sm:$0xff]   ;;  %v2839_v44 = vld [vmem:[#allocation5 + $0x528] ss:$16 sps:$4 sm:$0xff]  }
  0xc5   :  { %1376 = vmatpush1.bf16.msra.mxu0 %v2743_v45  ;;  %1505 = vmatpush1.bf16.msra.mxu1 %v2746_v46  ;;  %v2844_v45 = vld [vmem:[#allocation5 + $0x544] ss:$16 sps:$4 sm:$0xff]   ;;  %v2847_v46 = vld [vmem:[#allocation5 + $0x54c] ss:$16 sps:$4 sm:$0xff]  }
  0xc6   :  { %1377 = vmatprep.subr.bf16.mxu0 %v2751_v47  ;;  %1506 = vmatprep.subr.bf16.mxu1 %v2754_v48  ;;  %v2842_v47 = vld [vmem:[#allocation5 + $0x540] ss:$16 sps:$4 sm:$0xff]   ;;  %v2845_v48 = vld [vmem:[#allocation5 + $0x548] ss:$16 sps:$4 sm:$0xff]  }
  0xc9   :  { %1378 = vmatpush1.bf16.msra.mxu0 %v2749_v49  ;;  %1507 = vmatpush1.bf16.msra.mxu1 %v2752_v50  ;;  %v2850_v49 = vld [vmem:[#allocation5 + $0x564] ss:$16 sps:$4 sm:$0xff]   ;;  %v2853_v50 = vld [vmem:[#allocation5 + $0x56c] ss:$16 sps:$4 sm:$0xff]  }
  0xca   :  { %1379 = vmatprep.subr.bf16.mxu0 %v2757_v51  ;;  %1508 = vmatprep.subr.bf16.mxu1 %v2760_v52  ;;  %v2848_v51 = vld [vmem:[#allocation5 + $0x560] ss:$16 sps:$4 sm:$0xff]   ;;  %v2851_v52 = vld [vmem:[#allocation5 + $0x568] ss:$16 sps:$4 sm:$0xff]  }
  0xcd   :  { %1380 = vmatpush1.bf16.msra.mxu0 %v2755_v53  ;;  %1509 = vmatpush1.bf16.msra.mxu1 %v2758_v54  ;;  %v2856_v53 = vld [vmem:[#allocation5 + $0x584] ss:$16 sps:$4 sm:$0xff]   ;;  %v2859_v54 = vld [vmem:[#allocation5 + $0x58c] ss:$16 sps:$4 sm:$0xff]  }
  0xce   :  { %1381 = vmatprep.subr.bf16.mxu0 %v2763_v55  ;;  %1510 = vmatprep.subr.bf16.mxu1 %v2766_v56  ;;  %v2854_v55 = vld [vmem:[#allocation5 + $0x580] ss:$16 sps:$4 sm:$0xff]   ;;  %v2857_v56 = vld [vmem:[#allocation5 + $0x588] ss:$16 sps:$4 sm:$0xff]  }
  0xd1   :  { %1382 = vmatpush1.bf16.msra.mxu0 %v2761_v57  ;;  %1511 = vmatpush1.bf16.msra.mxu1 %v2764_v58  ;;  %v2862_v57 = vld [vmem:[#allocation5 + $0x5a4] ss:$16 sps:$4 sm:$0xff]   ;;  %v2865_v58 = vld [vmem:[#allocation5 + $0x5ac] ss:$16 sps:$4 sm:$0xff]  }
  0xd2   :  { %1383 = vmatprep.subr.bf16.mxu0 %v2769_v59  ;;  %1512 = vmatprep.subr.bf16.mxu1 %v2772_v60  ;;  %v2860_v59 = vld [vmem:[#allocation5 + $0x5a0] ss:$16 sps:$4 sm:$0xff]   ;;  %v2863_v60 = vld [vmem:[#allocation5 + $0x5a8] ss:$16 sps:$4 sm:$0xff]  }
  0xd5   :  { %1384 = vmatpush1.bf16.msra.mxu0 %v2767_v61  ;;  %1513 = vmatpush1.bf16.msra.mxu1 %v2770_v62  ;;  %v2868_v61 = vld [vmem:[#allocation5 + $0x5c4] ss:$16 sps:$4 sm:$0xff]   ;;  %v2871_v62 = vld [vmem:[#allocation5 + $0x5cc] ss:$16 sps:$4 sm:$0xff]  }
  0xd6   :  { %1385 = vmatprep.subr.bf16.mxu0 %v2775_v63  ;;  %1514 = vmatprep.subr.bf16.mxu1 %v2778_v0  ;;  %v2866_v63 = vld [vmem:[#allocation5 + $0x5c0] ss:$16 sps:$4 sm:$0xff]   ;;  %v2869_v0 = vld [vmem:[#allocation5 + $0x5c8] ss:$16 sps:$4 sm:$0xff]  }
  0xd9   :  { %1386 = vmatpush1.bf16.msra.mxu0 %v2773_v1  ;;  %1515 = vmatpush1.bf16.msra.mxu1 %v2776_v2  ;;  %v2874_v1 = vld [vmem:[#allocation5 + $0x5e4] ss:$16 sps:$4 sm:$0xff]   ;;  %v2877_v2 = vld [vmem:[#allocation5 + $0x5ec] ss:$16 sps:$4 sm:$0xff]  }
  0xda   :  { %1398 = vmatprep.subr.bf16.mxu0 %v2784_v3  ;;  %1527 = vmatprep.subr.bf16.mxu1 %v2787_v4  ;;  %v2872_v3 = vld [vmem:[#allocation5 + $0x5e0] ss:$16 sps:$4 sm:$0xff]   ;;  %v2875_v4 = vld [vmem:[#allocation5 + $0x5e8] ss:$16 sps:$4 sm:$0xff]  }
  0xdc   :  { %1388 = vmatmul.mubr.bf16.vlgmr.msra.gmra.mrb[0].mxu0 %v2779_v5  ;;  %1517 = vmatmul.mubr.bf16.vlgmr.msra.gmra.mrb[0].mxu1 %v2779_v5  ;;  %v2881_v5 = vld [vmem:[#allocation7 + $0x40] sm:$0xff]  }
  0xdd   :  { %1399 = vmatpush1.bf16.msra.mxu0 %v2782_v6  ;;  %1528 = vmatpush1.bf16.msra.mxu1 %v2785_v7  ;;  %v2882_v6 = vld [vmem:[#allocation7 + $0xc0] sm:$0xff]  }
  0xde   :  { %1400 = vmatprep.subr.bf16.mxu0 %v2790_v8  ;;  %1529 = vmatprep.subr.bf16.mxu1 %v2793_v9  ;;  %v2878_v7 = vld [vmem:[#allocation2 + $0x10] ss:$24 sps:$4 sm:$0xff]  }
  0xdf   :  { %1430 = vmatprep.mubr.bf16.mxu0 %v2880_v12  ;;  %1559 = vmatprep.mubr.bf16.mxu1 %v2880_v12  ;;  %v2883_v8 = vld [vmem:[#allocation7] sm:$0xff]   ;;  %v2887_v12 = vld [vmem:[#allocation7 + $0x8] sm:$0xff]  }
  0xe0   :  { %v2884_v9 = vld [vmem:[#allocation7 + $0x80] sm:$0xff]  }
  0xe1   :  { %1401 = vmatpush1.bf16.msra.mxu0 %v2788_v10  ;;  %1530 = vmatpush1.bf16.msra.mxu1 %v2791_v11  ;;  %v2885_v10 = vld [vmem:[#allocation7 + $0x48] sm:$0xff]  }
  0xe2   :  { %1402 = vmatprep.subr.bf16.mxu0 %v2796_v13  ;;  %1531 = vmatprep.subr.bf16.mxu1 %v2799_v14  ;;  %v2886_v11 = vld [vmem:[#allocation7 + $0xc8] sm:$0xff]   ;;  %v2889_v14 = vld [vmem:[#allocation7 + $0x50] sm:$0xff]  }
  0xe3   :  { %v2888_v13 = vld [vmem:[#allocation7 + $0x88] sm:$0xff]  }
  0xe5   :  { %1403 = vmatpush1.bf16.msra.mxu0 %v2794_v15  ;;  %1532 = vmatpush1.bf16.msra.mxu1 %v2797_v16  ;;  %v2890_v15 = vld [vmem:[#allocation7 + $0xd0] sm:$0xff]  }
  0xe6   :  { %1404 = vmatprep.subr.bf16.mxu0 %v2802_v17  ;;  %1533 = vmatprep.subr.bf16.mxu1 %v2805_v18  ;;  %v2891_v16 = vld [vmem:[#allocation7 + $0x10] sm:$0xff]   ;;  %v2893_v18 = vld [vmem:[#allocation7 + $0x58] sm:$0xff]  }
  0xe7   :  { %v2892_v17 = vld [vmem:[#allocation7 + $0x90] sm:$0xff]  }
  0xe9   :  { %1405 = vmatpush1.bf16.msra.mxu0 %v2800_v19  ;;  %1534 = vmatpush1.bf16.msra.mxu1 %v2803_v20  ;;  %v2894_v19 = vld [vmem:[#allocation7 + $0xd8] sm:$0xff]  }
  0xea   :  { %1406 = vmatprep.subr.bf16.mxu0 %v2808_v21  ;;  %1535 = vmatprep.subr.bf16.mxu1 %v2811_v22  ;;  %v2895_v20 = vld [vmem:[#allocation7 + $0x18] sm:$0xff]   ;;  %v2897_v22 = vld [vmem:[#allocation7 + $0x60] sm:$0xff]  }
  0xeb   :  { %v2896_v21 = vld [vmem:[#allocation7 + $0x98] sm:$0xff]  }
  0xed   :  { %1407 = vmatpush1.bf16.msra.mxu0 %v2806_v23  ;;  %1536 = vmatpush1.bf16.msra.mxu1 %v2809_v24  ;;  %v2898_v23 = vld [vmem:[#allocation7 + $0xe0] sm:$0xff]  }
  0xee   :  { %1408 = vmatprep.subr.bf16.mxu0 %v2814_v25  ;;  %1537 = vmatprep.subr.bf16.mxu1 %v2817_v26  ;;  %v2899_v24 = vld [vmem:[#allocation7 + $0x20] sm:$0xff]   ;;  %v2901_v26 = vld [vmem:[#allocation7 + $0x68] sm:$0xff]  }
  0xef   :  { %v2900_v25 = vld [vmem:[#allocation7 + $0xa0] sm:$0xff]  }
  0xf1   :  { %1409 = vmatpush1.bf16.msra.mxu0 %v2812_v27  ;;  %1538 = vmatpush1.bf16.msra.mxu1 %v2815_v28  ;;  %v2902_v27 = vld [vmem:[#allocation7 + $0xe8] sm:$0xff]  }
  0xf2   :  { %1410 = vmatprep.subr.bf16.mxu0 %v2820_v29  ;;  %1539 = vmatprep.subr.bf16.mxu1 %v2823_v30  ;;  %v2903_v28 = vld [vmem:[#allocation7 + $0x28] sm:$0xff]   ;;  %v2905_v30 = vld [vmem:[#allocation7 + $0x70] sm:$0xff]  }
  0xf3   :  { %v2904_v29 = vld [vmem:[#allocation7 + $0xa8] sm:$0xff]  }
  0xf5   :  { %1411 = vmatpush1.bf16.msra.mxu0 %v2818_v31  ;;  %1540 = vmatpush1.bf16.msra.mxu1 %v2821_v32  ;;  %v2906_v31 = vld [vmem:[#allocation7 + $0xf0] sm:$0xff]  }
  0xf6   :  { %1412 = vmatprep.subr.bf16.mxu0 %v2826_v33  ;;  %1541 = vmatprep.subr.bf16.mxu1 %v2829_v34  ;;  %v2907_v32 = vld [vmem:[#allocation7 + $0x30] sm:$0xff]   ;;  %v2909_v34 = vld [vmem:[#allocation7 + $0x78] sm:$0xff]  }
  0xf7   :  { %v2908_v33 = vld [vmem:[#allocation7 + $0xb0] sm:$0xff]  }
  0xf9   :  { %1413 = vmatpush1.bf16.msra.mxu0 %v2824_v35  ;;  %1542 = vmatpush1.bf16.msra.mxu1 %v2827_v36  ;;  %v2910_v35 = vld [vmem:[#allocation7 + $0xf8] sm:$0xff]  }
  0xfa   :  { %1414 = vmatprep.subr.bf16.mxu0 %v2832_v37  ;;  %1543 = vmatprep.subr.bf16.mxu1 %v2835_v38  ;;  %v2911_v36 = vld [vmem:[#allocation7 + $0x38] sm:$0xff]   ;;  %v3080_v38 = vmov 0.0  }
  0xfb   :  { %v2912_v37 = vld [vmem:[#allocation7 + $0xb8] sm:$0xff]  }
  0xfd   :  { %1415 = vmatpush1.bf16.msra.mxu0 %v2830_v39  ;;  %1544 = vmatpush1.bf16.msra.mxu1 %v2833_v40  ;;  %v302_v39 = vlaneseq }
  0xfe   :  { %1416 = vmatprep.subr.bf16.mxu0 %v2838_v41  ;;  %1545 = vmatprep.subr.bf16.mxu1 %v2841_v42 }
  0xff   :  { %v303_v40 = vshrl.u32 %v302_v39, 7 }
 0x101   :  { %1417 = vmatpush1.bf16.msra.mxu0 %v2836_v43  ;;  %1546 = vmatpush1.bf16.msra.mxu1 %v2839_v44  ;;  %v304_v41 = vsub.s32 0, %v303_v40  ;;  %v312_v42 = vsub.s32 2, %v303_v40  ;;  %v300_v43 = vld [vmem:[%s3249_s2] sm:$0xf]  ;;  %v308_v44 = vsub.s32 1, %v303_v40 }
 0x102   :  { %1418 = vmatprep.subr.bf16.mxu0 %v2844_v45  ;;  %1547 = vmatprep.subr.bf16.mxu1 %v2847_v46  ;;  %v316_v45 = vsub.s32 3, %v303_v40 }
 0x103   :  { %v305_v46 = vrot.slane %v300_v43, %v304_v41 }
 0x105   :  { %1419 = vmatpush1.bf16.msra.mxu0 %v2842_v47  ;;  %1548 = vmatpush1.bf16.msra.mxu1 %v2845_v48  ;;  %v313_v47 = vrot.slane %v300_v43, %v312_v42  ;;  %v309_v48 = vrot.slane %v300_v43, %v308_v44 }
 0x106   :  { %1420 = vmatprep.subr.bf16.mxu0 %v2850_v49  ;;  %1549 = vmatprep.subr.bf16.mxu1 %v2853_v50  ;;  %v317_v49 = vrot.slane %v300_v43, %v316_v45 }
 0x109   :  { %1421 = vmatpush1.bf16.msra.mxu0 %v2848_v51  ;;  %1550 = vmatpush1.bf16.msra.mxu1 %v2851_v52 }
 0x10a   :  { %1422 = vmatprep.subr.bf16.mxu0 %v2856_v53  ;;  %1551 = vmatprep.subr.bf16.mxu1 %v2859_v54 }
 0x10d   :  { %1423 = vmatpush1.bf16.msra.mxu0 %v2854_v55  ;;  %1552 = vmatpush1.bf16.msra.mxu1 %v2857_v56 }
 0x10e   :  { %1424 = vmatprep.subr.bf16.mxu0 %v2862_v57  ;;  %1553 = vmatprep.subr.bf16.mxu1 %v2865_v58 }
 0x111   :  { %1425 = vmatpush1.bf16.msra.mxu0 %v2860_v59  ;;  %1554 = vmatpush1.bf16.msra.mxu1 %v2863_v60 }
 0x112   :  { %1426 = vmatprep.subr.bf16.mxu0 %v2868_v61  ;;  %1555 = vmatprep.subr.bf16.mxu1 %v2871_v62 }
 0x115   :  { %1427 = vmatpush1.bf16.msra.mxu0 %v2866_v63  ;;  %1556 = vmatpush1.bf16.msra.mxu1 %v2869_v0 }
 0x116   :  { %1428 = vmatprep.subr.bf16.mxu0 %v2874_v1  ;;  %1557 = vmatprep.subr.bf16.mxu1 %v2877_v2 }
 0x119   :  { %1429 = vmatpush1.bf16.msra.mxu0 %v2872_v3  ;;  %1558 = vmatpush1.bf16.msra.mxu1 %v2875_v4 }
 0x11a   :  { %2444 = vmatprep.subr.bf16.mxu0 %v2881_v5  ;;  %2466 = vmatprep.subr.bf16.mxu1 %v2882_v6 }
 0x11c   :  { %1431 = vmatmul.mubr.bf16.vlgmr.msra.gmra.mrb[0].mxu0 %v2878_v7  ;;  %1560 = vmatmul.mubr.bf16.vlgmr.msra.gmra.mrb[0].mxu1 %v2878_v7 }
 0x11d   :  { %2445 = vmatpush3.bf16.msra.mxu0 %v2883_v8  ;;  %2467 = vmatpush3.bf16.msra.mxu1 %v2884_v9 }
 0x11e   :  { %2446 = vmatprep.subr.bf16.mxu0 %v2885_v10  ;;  %2468 = vmatprep.subr.bf16.mxu1 %v2886_v11 }
 0x121   :  { %2447 = vmatpush3.bf16.msra.mxu0 %v2887_v12  ;;  %2469 = vmatpush3.bf16.msra.mxu1 %v2888_v13 }
 0x122   :  { %2448 = vmatprep.subr.bf16.mxu0 %v2889_v14  ;;  %2470 = vmatprep.subr.bf16.mxu1 %v2890_v15  ;;  %v2913_v14 = vld [vmem:[#allocation8] sm:$0xff]   ;;  %v2914_v15 = vld [vmem:[#allocation8 + $0x8] sm:$0xff]  }
 0x125   :  { %2449 = vmatpush3.bf16.msra.mxu0 %v2891_v16  ;;  %2471 = vmatpush3.bf16.msra.mxu1 %v2892_v17  ;;  %v2915_v16 = vld [vmem:[#allocation8 + $0x10] sm:$0xff]   ;;  %v2916_v17 = vld [vmem:[#allocation8 + $0x18] sm:$0xff]  }
 0x126   :  { %2450 = vmatprep.subr.bf16.mxu0 %v2893_v18  ;;  %2472 = vmatprep.subr.bf16.mxu1 %v2894_v19  ;;  %v2917_v18 = vld [vmem:[#allocation8 + $0x20] sm:$0xff]   ;;  %v2918_v19 = vld [vmem:[#allocation8 + $0x28] sm:$0xff]  }
 0x129   :  { %2451 = vmatpush3.bf16.msra.mxu0 %v2895_v20  ;;  %2473 = vmatpush3.bf16.msra.mxu1 %v2896_v21  ;;  %v2919_v20 = vld [vmem:[#allocation8 + $0x30] sm:$0xff]   ;;  %v2920_v21 = vld [vmem:[#allocation8 + $0x38] sm:$0xff]  }
 0x12a   :  { %2452 = vmatprep.subr.bf16.mxu0 %v2897_v22  ;;  %2474 = vmatprep.subr.bf16.mxu1 %v2898_v23  ;;  %v2921_v22 = vld [vmem:[#allocation10] sm:$0xff]   ;;  %v2922_v23 = vld [vmem:[#allocation10 + $0x8] sm:$0xff]  }
 0x12d   :  { %2453 = vmatpush3.bf16.msra.mxu0 %v2899_v24  ;;  %2475 = vmatpush3.bf16.msra.mxu1 %v2900_v25  ;;  %v2923_v24 = vld [vmem:[#allocation10 + $0x10] sm:$0xff]   ;;  %v2924_v25 = vld [vmem:[#allocation10 + $0x18] sm:$0xff]  }
 0x12e   :  { %2454 = vmatprep.subr.bf16.mxu0 %v2901_v26  ;;  %2476 = vmatprep.subr.bf16.mxu1 %v2902_v27  ;;  %v2925_v26 = vld [vmem:[#allocation10 + $0x20] sm:$0xff]   ;;  %v2926_v27 = vld [vmem:[#allocation10 + $0x28] sm:$0xff]  }
 0x131   :  { %2455 = vmatpush3.bf16.msra.mxu0 %v2903_v28  ;;  %2477 = vmatpush3.bf16.msra.mxu1 %v2904_v29 }
 0x132   :  { %2456 = vmatprep.subr.bf16.mxu0 %v2905_v30  ;;  %2478 = vmatprep.subr.bf16.mxu1 %v2906_v31  ;;  %v2384_v30 = vld [vmem:[%s3251_s4] ss:$0 sm:$0xff] }
 0x135   :  { %2457 = vmatpush3.bf16.msra.mxu0 %v2907_v32  ;;  %2479 = vmatpush3.bf16.msra.mxu1 %v2908_v33 }
 0x136   :  { %2458 = vmatprep.subr.bf16.mxu0 %v2909_v34  ;;  %2480 = vmatprep.subr.bf16.mxu1 %v2910_v35 }
 0x139   :  { %2459 = vmatpush3.bf16.msra.mxu0 %v2911_v36  ;;  %2481 = vmatpush3.bf16.msra.mxu1 %v2912_v37 }
 0x13a   :  { %2506 = vmatprep.subr.bf16.mxu0 %v3080_v38  ;;  %2526 = vmatprep.subr.bf16.mxu1 %v3080_v38 }
 0x1ef   :  { %v1432_v50 = vpop.f32.mrb[0].mxu0  ;;  %v1561_v51 = vpop.f32.mrb[0].mxu1 }
 0x1f0   :  { %v2546_v52 = vadd.f32 %v1432_v50, %v305_v46  ;;  %v2550_v53 = vadd.f32 %v1561_v51, %v313_v47  ;;  %v1434_v54 = vpop.f32.mrb[1].mxu0  ;;  %v1563_v55 = vpop.f32.mrb[1].mxu1  ;;  %v2928_v50 = vld [vmem:[#allocation10 + $0x38] sm:$0xff]   ;;  %v2417_v51 = vld [vmem:[%s3253_s6] ss:$0 sm:$0xff]  ;;  %s3039_s6 = scalar_lea.vmem %s2173_s16, 128 }
 0x1f1   :  { %v2547_v56 = vadd.f32 %v1434_v54, %v309_v48  ;;  %v2551_v57 = vadd.f32 %v1563_v55, %v317_v49  ;;  %v1436_v58 = vpop.f32.mrb[2].mxu0  ;;  %v1565_v59 = vpop.f32.mrb[2].mxu1  ;;  %p3040_p12 = scmp.ne.s32.totalorder %s2173_s16, %s3039_s6  ;;  %p3045_p0 = scmp.lt.s32.totalorder %s3039_s6, %s3039_s6 }
 0x1f2   :  { %v2548_v60 = vadd.f32 %v1436_v58, %v305_v46  ;;  %v2552_v61 = vadd.f32 %v1565_v59, %v313_v47  ;;  %v1438_v62 = vpop.f32.mrb[3].mxu0  ;;  %v1567_v63 = vpop.f32.mrb[3].mxu1  ;;  %v1570_v2 = vmax.f32 %v2546_v52, 0.0  ;;  %v1572_v3 = vmax.f32 %v2550_v53, 0.0 }
 0x1f3   :  { %v2549_v0 = vadd.f32 %v1438_v62, %v309_v48  ;;  %v2553_v1 = vadd.f32 %v1567_v63, %v317_v49  ;;  %v1571_v6 = vmax.f32 %v2547_v56, 0.0  ;;  %v1573_v7 = vmax.f32 %v2551_v57, 0.0  ;;  %v2927_v49 = vld [vmem:[#allocation10 + $0x30] sm:$0xff]   ;;  %p3046_p1 = por %p3045_p0, %p3044_p13 }
 0x1f4   :  { %v1574_v4 = vmax.f32 %v2548_v60, 0.0  ;;  %v1576_v5 = vmax.f32 %v2552_v61, 0.0 }
 0x1f5   :  { %v1575_v8 = vmax.f32 %v2549_v0, 0.0  ;;  %v1577_v9 = vmax.f32 %v2553_v1, 0.0  ;;  %p3047_p2 = pnand %p3046_p1, %p3040_p12 }
 0x1f6   :  { %v1578_v10 = vpack.c.bf16 %v1574_v4, %v1570_v2  ;;  %v1580_v11 = vpack.c.bf16 %v1576_v5, %v1572_v3 }
 0x1f7   :  { %v1579_v12 = vpack.c.bf16 %v1575_v8, %v1571_v6  ;;  %v1581_v13 = vpack.c.bf16 %v1577_v9, %v1573_v7 }
 0x1f9   :  { %1877 = vmatprep.mubr.bf16.mxu0 %v1579_v12  ;;  %1918 = vmatprep.mubr.bf16.mxu1 %v1581_v13 }
 0x1fa   :  { %1878 = vmatmul.mubr.bf16.vlgmr.msra.gmra.mrb[4].mxu0 %v1578_v10  ;;  %1919 = vmatmul.mubr.bf16.vlgmr.msra.gmra.mrb[4].mxu1 %v1580_v11 }
 0x1fb   :  { %2507 = vmatpush3.bf16.msra.mxu0 %v2913_v14  ;;  %2522 = vmatprep.mubr.msk.bf16.mxu0 %vm3081_vm0, %v3080_v38 }
 0x1fc   :  { %2508 = vmatprep.subr.bf16.mxu0 %v3080_v38  ;;  %2542 = vmatprep.mubr.msk.bf16.mxu1 %vm3081_vm0, %v3080_v38 }
 0x1fd   :  { %2527 = vmatpush3.bf16.msra.mxu1 %v2921_v22 }
 0x1fe   :  { %2528 = vmatprep.subr.bf16.mxu1 %v3080_v38 }
 0x1ff   :  { %2509 = vmatpush3.bf16.msra.mxu0 %v2914_v15 }
 0x200   :  { %2510 = vmatprep.subr.bf16.mxu0 %v3080_v38 }
 0x201   :  { %2529 = vmatpush3.bf16.msra.mxu1 %v2922_v23 }
 0x202   :  { %2530 = vmatprep.subr.bf16.mxu1 %v3080_v38 }
 0x203   :  { %2511 = vmatpush3.bf16.msra.mxu0 %v2915_v16 }
 0x204   :  { %2512 = vmatprep.subr.bf16.mxu0 %v3080_v38 }
 0x205   :  { %2531 = vmatpush3.bf16.msra.mxu1 %v2923_v24 }
 0x206   :  { %2532 = vmatprep.subr.bf16.mxu1 %v3080_v38 }
 0x207   :  { %2513 = vmatpush3.bf16.msra.mxu0 %v2916_v17 }
 0x208   :  { %2514 = vmatprep.subr.bf16.mxu0 %v3080_v38 }
 0x209   :  { %2533 = vmatpush3.bf16.msra.mxu1 %v2924_v25 }
 0x20a   :  { %2534 = vmatprep.subr.bf16.mxu1 %v3080_v38 }
 0x20b   :  { %2515 = vmatpush3.bf16.msra.mxu0 %v2917_v18 }
 0x20c   :  { %2516 = vmatprep.subr.bf16.mxu0 %v3080_v38 }
 0x20d   :  { %2535 = vmatpush3.bf16.msra.mxu1 %v2925_v26 }
 0x20e   :  { %2536 = vmatprep.subr.bf16.mxu1 %v3080_v38 }
 0x20f   :  { %2517 = vmatpush3.bf16.msra.mxu0 %v2918_v19 }
 0x210   :  { %2518 = vmatprep.subr.bf16.mxu0 %v3080_v38 }
 0x211   :  { %2537 = vmatpush3.bf16.msra.mxu1 %v2926_v27 }
 0x212   :  { %2538 = vmatprep.subr.bf16.mxu1 %v3080_v38 }
 0x213   :  { %2519 = vmatpush3.bf16.msra.mxu0 %v2919_v20 }
 0x214   :  { %2520 = vmatprep.subr.bf16.mxu0 %v3080_v38 }
 0x215   :  { %2539 = vmatpush3.bf16.msra.mxu1 %v2927_v49 }
 0x216   :  { %2540 = vmatprep.subr.bf16.mxu1 %v3080_v38  ;;  %v2426_v38 = vld [vmem:[%s3255_s8] ss:$0 sm:$0xff] }
 0x217   :  { %2521 = vmatpush3.bf16.msra.mxu0 %v2920_v21 }
 0x219   :  { %2541 = vmatpush3.bf16.msra.mxu1 %v2928_v50 }
 0x2cd   :  { %v2460_v28 = vpop.f32.mrb[4].mxu0  ;;  %v2482_v29 = vpop.f32.mrb[4].mxu1 }
 0x2ce   :  { %v2461_v31 = vpop.f32.mrb[5].mxu0  ;;  %v2483_v32 = vpop.f32.mrb[5].mxu1 }
 0x2cf   :  { %v2462_v33 = vadd.f32 %v2461_v31, %v2460_v28  ;;  %v2484_v34 = vadd.f32 %v2483_v32, %v2482_v29  ;;  %v2463_v35 = vpop.f32.mrb[6].mxu0  ;;  %v2485_v36 = vpop.f32.mrb[6].mxu1 }
 0x2d0   :  { %v2464_v37 = vpop.f32.mrb[7].mxu0  ;;  %v2486_v39 = vpop.f32.mrb[7].mxu1 }
 0x2d1   :  { %v1880_v40 = vadd.f32 %v2462_v33, %v2384_v30  ;;  %v2465_v41 = vadd.f32 %v2464_v37, %v2463_v35  ;;  %v2487_v42 = vadd.f32 %v2486_v39, %v2485_v36 }
 0x2d3   :  { %v1921_v43 = vadd.f32 %v2484_v34, %v1880_v40  ;;  %v1883_v44 = vadd.f32 %v2465_v41, %v2384_v30 }
 0x2d5   :  { %v1924_v45 = vadd.f32 %v2487_v42, %v1883_v44  ;;  %v1927_v46 = vmax.f32 %v1921_v43, 0.0 }
 0x2d7   :  { %v1928_v47 = vmax.f32 %v1924_v45, 0.0 }
 0x2d9   :  { %v1929_v48 = vpack.c.bf16 %v1928_v47, %v1927_v46 }
 0x2db   :  { %2523 = vmatmul.mubr.bf16.vlgmr.msra.gmra.mrb[8].mxu0 %v1929_v48 }
 0x3ae   :  { %v2035_v52 = vpop.f32.mrb[8].mxu0 }
 0x3af   :  { %v2036_v53 = vadd.f32 %v2417_v51, %v2035_v52  ;;  %v2524_v54 = vpop.f32.mrb[9].mxu0 }
 0x3b0   :  { %v2038_v55 = vpop.f32.mrb[10].mxu0 }
 0x3b1   :  { %v2039_v56 = vadd.f32 %v2417_v51, %v2038_v55  ;;  %v2525_v57 = vpop.f32.mrb[11].mxu0  ;;  %v2042_v58 = vmax.f32 %v2036_v53, 0.0 }
 0x3b3   :  { %v2043_v59 = vmax.f32 %v2039_v56, 0.0 }
 0x3b5   :  { %v2044_v60 = vpack.c.bf16 %v2043_v59, %v2042_v58 }
 0x3b7   :  { %2543 = vmatmul.mubr.bf16.vlgmr.msra.gmra.mrb[8].mxu1 %v2044_v60 }
 0x48a   :  { %v2150_v61 = vpop.f32.mrb[8].mxu1 }
 0x48b   :  { %v2544_v62 = vpop.f32.mrb[9].mxu1  ;;  %v2151_v0 = vadd.f32 %v2426_v38, %v2150_v61 }
 0x48c   :  { %v2153_v63 = vpop.f32.mrb[10].mxu1 }
 0x48d   :  { %v2154_v1 = vadd.f32 %v2426_v38, %v2153_v63  ;;  %v2545_v2 = vpop.f32.mrb[11].mxu1 }
 0x48f   :  { %v2442_v3 = vpack.c.bf16 %v2154_v1, %v2151_v0 }
 0x491   :  { %2443 = vst [vmem:[#allocation11] sm:$0xff] %v2442_v3  }
 0x492   :  { %3050 = shalt.err (!%p3047_p2)
}
 0x493   :  { %s3051_s18 = scalar_lea.hbm %s3256_s9, 128 }
 0x494   :  { %p3052_p3 = scmp.ne.s32.totalorder %s3256_s9, %s3051_s18  ;;  %p3055_p4 = scmp.lt.u32.totalorder %s3051_s18, %s3256_s9 }
 0x496   :  { %p3057_p5 = pnand %p3055_p4, %p3052_p3 }
 0x498   :  { %3060 = shalt.err (!%p3057_p5)
}
 0x499   :  { %2178 = dma.vmem_to_hbm [thread:$0]  %s2173_s16, 128, %s3256_s9, [#allocation4], %s3074_s10, %s3074_s10, %s3075_s14  }
 0x49a   :  { %3067 = dma.done.wait [#allocation4], 128  }
 0x49b   :  { %3068 = vsyncadd [#allocation4], 4294967168 }
 0x49c   :  { %2182 = vsyncpa [#allocation3], 1 }
 0x49d   :  { %2183 = vsyncpa [#allocation6], 1 }
 0x49e   :  { %2184 = vsyncpa [#allocation9], 1 }
 0x49f   :  { %2185 = vsyncpa [#allocation4], 1 }

</bundles_post_ra>
